<compile_context>
chip_gen: v6e
topology: v6e:2x2x1
jax: 0.10.0
libtpu: 0.0.40
codegen_flags: <defaults>
</compile_context>

<pallas_src>
import jax
import jax.numpy as jnp
from jax.experimental import pallas as pl
from jax.experimental.pallas import tpu as pltpu


# ----------------------------- kernels ------------------------------------


def _mlp_kernel(x_ref, w1_ref, b1_ref, o_ref):
    """o = tanh(W1 @ x + b1), x: (4, T) -> o: (8, T).  (alone=False path)"""
    x = x_ref[...]                        # (4, T)
    w1 = w1_ref[...]                      # (8, 4) f32
    # Unrolled VPU contraction: (8,1) lane-broadcast * (1,T); acc seeded with
    # the bias (saves one add).  bf16 x promotes to f32 against f32 weights.
    acc = b1_ref[...] + w1[:, 0:1] * x[0:1, :]
    for k in range(1, 4):
        acc = acc + w1[:, k : k + 1] * x[k : k + 1, :]
    # NOTE: on v7x (3.2 TB/s) the single EUP can become the binding slot for
    # this tanh; if xprof shows EUP saturation, compute it in bf16 there.
    o_ref[...] = jnp.tanh(acc).astype(o_ref.dtype)


def _mlp_alone_kernel(x_ref, w1_ref, b1_ref, w2_ref, b2_ref, o_ref):
    """o = sigmoid(W2 @ tanh(W1 @ x + b1) + b2), x: (4, T) -> o: (1, T)."""
    x = x_ref[...]                        # (4, T)
    w1 = w1_ref[...]                      # (8, 4)
    acc = b1_ref[...] + w1[:, 0:1] * x[0:1, :]
    for k in range(1, 4):
        acc = acc + w1[:, k : k + 1] * x[k : k + 1, :]
    h = jnp.tanh(acc)                     # (8, T) f32
    # Second layer: elementwise scale then sublane (XLU) reduction -> (1, T).
    z = jnp.sum(w2_ref[...] * h, axis=0, keepdims=True) + b2_ref[...]
    o_ref[...] = jax.nn.sigmoid(z).astype(o_ref.dtype)


# ----------------------------- wrappers -------------------------------------


def _cdiv(a, b):
    return (a + b - 1) // b


def _round_up(a, b):
    return _cdiv(a, b) * b


def fluor_mlp_feature_major(x_fm, params, *, alone=False,
                            tile_lanes=64 * 1024, out_dtype=None):
    """Feature-major fast path: x_fm (4, N) -> (8, N) (or (1, N) if alone).

    No wrapper-side transposes; only a lane pad when N % 128 != 0.
    """
    f_in, n = x_fm.shape
    if f_in != 4:
        raise ValueError(f"expected feature-major input (4, N), got {x_fm.shape}")
    out_dtype = x_fm.dtype if out_dtype is None else jnp.dtype(out_dtype)

    # --- tile selection (big steps, bounded padding waste) ------------------
    tile_lanes = max(128, _round_up(int(tile_lanes), 128))
    n_pad = _round_up(max(n, 1), 128)
    if n_pad <= tile_lanes:
        steps, tile = 1, n_pad
    else:
        steps = _cdiv(n_pad, tile_lanes)
        tile = _round_up(_cdiv(n_pad, steps), 128)   # waste < 128 lanes/step
    n_grid = steps * tile
    if n_grid != n:
        x_fm = jnp.pad(x_fm, ((0, 0), (0, n_grid - n)))

    w1, b1 = params["w1"], params["b1"]              # (8, 4), (8, 1)

    f_out = 1 if alone else 8
    x_bytes = 4 * tile * x_fm.dtype.itemsize
    o_bytes = f_out * tile * out_dtype.itemsize
    # Double-buffered input+output blocks + weights + headroom, capped well
    # below v7x's 64 MiB physical VMEM.
    vmem_limit = int(min(2 * (x_bytes + o_bytes) + (8 << 20), 48 << 20))

    grid = (steps,)
    x_spec = pl.BlockSpec((4, tile), lambda i: (0, i))
    # Constant index_map -> weights DMA'd once and kept resident in VMEM.
    w1_spec = pl.BlockSpec((8, 4), lambda i: (0, 0))
    b1_spec = pl.BlockSpec((8, 1), lambda i: (0, 0))
    cparams = pltpu.CompilerParams(dimension_semantics=("parallel",),
                                   vmem_limit_bytes=vmem_limit)

    if not alone:
        out = pl.pallas_call(
            _mlp_kernel,
            out_shape=jax.ShapeDtypeStruct((8, n_grid), out_dtype),
            grid=grid,
            in_specs=[x_spec, w1_spec, b1_spec],
            out_specs=pl.BlockSpec((8, tile), lambda i: (0, i)),
            compiler_params=cparams,
        )(x_fm, w1, b1)
    else:
        w2, b2 = params["w2"], params["b2"]          # (8, 1), (1, 1)
        out = pl.pallas_call(
            _mlp_alone_kernel,
            out_shape=jax.ShapeDtypeStruct((1, n_grid), out_dtype),
            grid=grid,
            in_specs=[
                x_spec, w1_spec, b1_spec,
                pl.BlockSpec((8, 1), lambda i: (0, 0)),
                pl.BlockSpec((1, 1), lambda i: (0, 0)),
            ],
            out_specs=pl.BlockSpec((1, tile), lambda i: (0, i)),
            compiler_params=cparams,
        )(x_fm, w1, b1, w2, b2)

    return out if n_grid == n else out[:, :n]        # (f_out, N)


def fluor_mlp(batch, params, *, alone=False, tile_lanes=64 * 1024,
              out_dtype=None):
    """Module-semantics entry: batch=(spectrum, fluor_line, fluor_img),
    fluor_line (N, 4) -> (N, 8) (or (N, 1) if alone), like FluorMLP.forward.

    The two transposes below are caller-side layout plumbing (one extra HBM
    pass each); callers that can keep activations feature-major should use
    fluor_mlp_feature_major directly and skip both.
    """
    spectrum, fluor_line, fluor_img = batch
    del spectrum, fluor_img                           # unused by forward()
    out_fm = fluor_mlp_feature_major(fluor_line.T, params, alone=alone,
                                     tile_lanes=tile_lanes,
                                     out_dtype=out_dtype)
    return out_fm.T                                   # (N, 8) or (N, 1)


# ------------------------- deterministic params -----------------------------


def init_params(key):
    """Mimics nn.Linear default init: U(-1/sqrt(fan_in), 1/sqrt(fan_in))."""
    k1, k2, k3, k4 = jax.random.split(key, 4)
    bound1 = 1.0 / jnp.sqrt(4.0)
    bound2 = 1.0 / jnp.sqrt(8.0)
    return {
        "w1": jax.random.uniform(k1, (8, 4), jnp.float32, -bound1, bound1),
        "b1": jax.random.uniform(k2, (8, 1), jnp.float32, -bound1, bound1),
        "w2": jax.random.uniform(k3, (8, 1), jnp.float32, -bound2, bound2),
        "b2": jax.random.uniform(k4, (1, 1), jnp.float32, -bound2, bound2),
    }


def _reference(fluor_line, params, alone):
    h = jnp.tanh(fluor_line @ params["w1"].T + params["b1"].T)     # (N, 8)
    if not alone:
        return h
    return jax.nn.sigmoid(h @ params["w2"] + params["b2"])         # (N, 1)


# --------------------------------- main -------------------------------------


if __name__ == "__main__":
    key = jax.random.PRNGKey(0)
    kp, ks, kl, ki, kl2 = jax.random.split(key, 5)

    params = init_params(kp)

    # Small correctness demo (the kernel only pays off for large batches).
    N = 8
    spectrum = jax.random.normal(ks, (N, 16), jnp.float32)           # unused by forward
    fluor_line = jax.random.normal(kl, (N, 4), jnp.float32)          # MLP input
    fluor_img = jax.random.normal(ki, (N, 1, 16, 16), jnp.float32)   # unused by forward
    batch = (spectrum, fluor_line, fluor_img)

    # Module-semantics path: (N,4) -> (N,8) / (N,1).
    out = jax.block_until_ready(fluor_mlp(batch, params, alone=False))
    out_alone = jax.block_until_ready(fluor_mlp(batch, params, alone=True))
    ref = _reference(fluor_line, params, alone=False)
    ref_alone = _reference(fluor_line, params, alone=True)
    assert out.shape == (N, 8) and out_alone.shape == (N, 1)
    assert jnp.allclose(out, ref, atol=1e-5), "alone=False mismatch"
    assert jnp.allclose(out_alone, ref_alone, atol=1e-5), "alone=True mismatch"

    # Feature-major fast path (zero wrapper layout passes) + multi-tile grid
    # with a non-aligned batch (N=300, tile=128 -> 3 grid steps + padding).
    N2 = 300
    fl2 = jax.random.normal(kl2, (N2, 4), jnp.float32)
    x_fm = fl2.T                                                     # (4, N2)
    out_fm = jax.block_until_ready(
        fluor_mlp_feature_major(x_fm, params, alone=False, tile_lanes=128))
    out_fm_alone = jax.block_until_ready(
        fluor_mlp_feature_major(x_fm, params, alone=True, tile_lanes=128))
    assert out_fm.shape == (8, N2) and out_fm_alone.shape == (1, N2)
    assert jnp.allclose(out_fm.T, _reference(fl2, params, False), atol=1e-5), \
        "feature-major alone=False mismatch"
    assert jnp.allclose(out_fm_alone.T, _reference(fl2, params, True), atol=1e-5), \
        "feature-major alone=True mismatch"

    print("KERNEL_OK")
</pallas_src>

<mosaic_0001>
module attributes {stable_mosaic.version = 11 : i64} {
  func.func @_mlp_kernel(%arg0: i32, %arg1: memref<4x128xf32, #tpu.memory_space<vmem>>, %arg2: memref<8x4xf32, #tpu.memory_space<vmem>>, %arg3: memref<8x1xf32, #tpu.memory_space<vmem>>, %arg4: memref<8x128xf32, #tpu.memory_space<vmem>>) attributes {dimension_semantics = [#tpu.dimension_semantics<parallel>], iteration_bounds = array<i64: 1>, scalar_prefetch = 0 : i64, scratch_operands = 0 : i64, tpu.core_type = #tpu.core_type<tc>, window_params = [{transform_indices = @transform_0, window_bounds = array<i64: 4, 128>}, {pipeline_mode = #tpu.pipeline_mode<synchronous>, transform_indices = @transform_1, window_bounds = array<i64: 8, 4>}, {pipeline_mode = #tpu.pipeline_mode<synchronous>, transform_indices = @transform_2, window_bounds = array<i64: 8, 1>}, {transform_indices = @transform_3, window_bounds = array<i64: 8, 128>}]} {
    %c0 = arith.constant 0 : index
    %c0_0 = arith.constant 0 : index
    %0 = vector.load %arg1[%c0, %c0_0] : memref<4x128xf32, #tpu.memory_space<vmem>>, vector<4x128xf32>
    %c0_1 = arith.constant 0 : index
    %c0_2 = arith.constant 0 : index
    %1 = vector.load %arg2[%c0_1, %c0_2] : memref<8x4xf32, #tpu.memory_space<vmem>>, vector<8x4xf32>
    %c0_3 = arith.constant 0 : index
    %c0_4 = arith.constant 0 : index
    %2 = vector.load %arg3[%c0_3, %c0_4] : memref<8x1xf32, #tpu.memory_space<vmem>>, vector<8x1xf32>
    %3 = vector.extract_strided_slice %1 {offsets = [0, 0], sizes = [8, 1], strides = [1, 1]} : vector<8x4xf32> to vector<8x1xf32>
    %4 = vector.extract_strided_slice %0 {offsets = [0, 0], sizes = [1, 128], strides = [1, 1]} : vector<4x128xf32> to vector<1x128xf32>
    %5 = vector.broadcast %3 : vector<8x1xf32> to vector<8x128xf32>
    %6 = vector.broadcast %4 : vector<1x128xf32> to vector<8x128xf32>
    %7 = arith.mulf %5, %6 : vector<8x128xf32>
    %8 = vector.broadcast %2 : vector<8x1xf32> to vector<8x128xf32>
    %9 = arith.addf %8, %7 : vector<8x128xf32>
    %10 = vector.extract_strided_slice %1 {offsets = [0, 1], sizes = [8, 1], strides = [1, 1]} : vector<8x4xf32> to vector<8x1xf32>
    %11 = vector.extract_strided_slice %0 {offsets = [1, 0], sizes = [1, 128], strides = [1, 1]} : vector<4x128xf32> to vector<1x128xf32>
    %12 = vector.broadcast %10 : vector<8x1xf32> to vector<8x128xf32>
    %13 = vector.broadcast %11 : vector<1x128xf32> to vector<8x128xf32>
    %14 = arith.mulf %12, %13 : vector<8x128xf32>
    %15 = arith.addf %9, %14 : vector<8x128xf32>
    %16 = vector.extract_strided_slice %1 {offsets = [0, 2], sizes = [8, 1], strides = [1, 1]} : vector<8x4xf32> to vector<8x1xf32>
    %17 = vector.extract_strided_slice %0 {offsets = [2, 0], sizes = [1, 128], strides = [1, 1]} : vector<4x128xf32> to vector<1x128xf32>
    %18 = vector.broadcast %16 : vector<8x1xf32> to vector<8x128xf32>
    %19 = vector.broadcast %17 : vector<1x128xf32> to vector<8x128xf32>
    %20 = arith.mulf %18, %19 : vector<8x128xf32>
    %21 = arith.addf %15, %20 : vector<8x128xf32>
    %22 = vector.extract_strided_slice %1 {offsets = [0, 3], sizes = [8, 1], strides = [1, 1]} : vector<8x4xf32> to vector<8x1xf32>
    %23 = vector.extract_strided_slice %0 {offsets = [3, 0], sizes = [1, 128], strides = [1, 1]} : vector<4x128xf32> to vector<1x128xf32>
    %24 = vector.broadcast %22 : vector<8x1xf32> to vector<8x128xf32>
    %25 = vector.broadcast %23 : vector<1x128xf32> to vector<8x128xf32>
    %26 = arith.mulf %24, %25 : vector<8x128xf32>
    %27 = arith.addf %21, %26 : vector<8x128xf32>
    %28 = math.tanh %27 : vector<8x128xf32>
    %c0_5 = arith.constant 0 : index
    %c0_6 = arith.constant 0 : index
    %29 = vector.load %arg4[%c0_5, %c0_6] : memref<8x128xf32, #tpu.memory_space<vmem>>, vector<8x128xf32>
    tpu.vector_store %arg4[%c0_5, %c0_6], %28 {strides = array<i32>} : memref<8x128xf32, #tpu.memory_space<vmem>>, vector<8x128xf32>,
    return
  }
  func.func @transform_0(%arg0: i32) -> (i32, i32) {
    %c0_i32 = arith.constant 0 : i32
    %c0_i32_0 = arith.constant 0 : i32
    return %c0_i32, %arg0 : i32, i32
  }
  func.func @transform_1(%arg0: i32) -> (i32, i32) {
    %c0_i32 = arith.constant 0 : i32
    %c0_i32_0 = arith.constant 0 : i32
    %c0_i32_1 = arith.constant 0 : i32
    return %c0_i32, %c0_i32_0 : i32, i32
  }
  func.func @transform_2(%arg0: i32) -> (i32, i32) {
    %c0_i32 = arith.constant 0 : i32
    %c0_i32_0 = arith.constant 0 : i32
    %c0_i32_1 = arith.constant 0 : i32
    return %c0_i32, %c0_i32_0 : i32, i32
  }
  func.func @transform_3(%arg0: i32) -> (i32, i32) {
    %c0_i32 = arith.constant 0 : i32
    %c0_i32_0 = arith.constant 0 : i32
    return %c0_i32, %arg0 : i32, i32
  }
}

</mosaic_0001>

<bundles_post_ra>
// kernel: tpu_custom_call.1
= control target key start
LH: loop header
LB: loop body
LE: loop exit
PB: predicated region body
PF: predicated region fallthrough
CT: control target
= control target key end

     0   :  { %v113_v1 = vmov 0   ;;  %v114_v2 = vmov 1   ;;  %s150_s0 = inlined_call_operand.vmem [shape: f32[4,128], index: 0, kind: input, shape index: {}]   ;;  %s151_s1 = inlined_call_operand.vmem [shape: f32[8,4], index: 1, kind: input, shape index: {}]   ;;  %s152_s2 = inlined_call_operand.vmem [shape: f32[8,1], index: 2, kind: input, shape index: {}]   ;;  %s153_s3 = inlined_call_operand.hbm [shape: f32[8,128], index: 3, kind: output, shape index: {}]  }
   0x1   :  { %v16_v0 = vld [vmem:[%s151_s1] sm:$0xff]  ;;  %85 = vset.pattern.permute.xlu0 %v113_v1  ;;  %86 = vset.pattern.permute.xlu1 %v114_v2 }
   0x2   :  { %8 = vsyncpa [#allocation3], 0  ;;  %20 = vperm.xlu0 %85, %v16_v0   ;;  %35 = vperm.xlu1 %86, %v16_v0   ;;  %v17_v3 = vld [vmem:[%s152_s2] sm:$0xff]  ;;  %v115_v4 = vmov 2   ;;  %v116_v5 = vmov 3   ;;  %v23_v6 = vlaneseq }
   0x3   :  { %v15_v9 = vld [vmem:[%s150_s0] sm:$0xf]  ;;  %s117_s0 = smov [#allocation2]  }
   0x4   :  { %v24_v7 = vshrl.u32 %v23_v6, 7  ;;  %s72_s2 = sshll.u32 %s117_s0, 4  ;;  %s73_s2 = int_to_ptr.vmem [resolvable:$true] %s72_s2 }
   0x5   :  { %s91_s17 = scalar_lea.vmem %s73_s2, 128  ;;  %p96_p1 = scmp.lt.s32.totalorder %s73_s2, %s73_s2 }
   0x6   :  { %30 = vperm.xlu0 %85, %v17_v3   ;;  %87 = vset.pattern.permute.xlu1 %v115_v4  ;;  %v25_v8 = vsub.s32 0, %v24_v7  ;;  %v40_v10 = vsub.s32 1, %v24_v7  ;;  %v50_v11 = vsub.s32 2, %v24_v7  ;;  %v60_v17 = vsub.s32 3, %v24_v7  ;;  %p92_p0 = scmp.ne.s32.totalorder %s73_s2, %s91_s17  ;;  %p97_p2 = scmp.lt.s32.totalorder %s91_s17, %s91_s17 }
   0x7   :  { %45 = vperm.xlu1 %87, %v16_v0  }
   0x8   :  { %v26_v12 = vrot.slane %v15_v9, %v25_v8  ;;  %v41_v15 = vrot.slane %v15_v9, %v40_v10  ;;  %v51_v16 = vrot.slane %v15_v9, %v50_v11  ;;  %v61_v24 = vrot.slane %v15_v9, %v60_v17  ;;  %p98_p3 = por %p97_p2, %p96_p1 }
   0xa   :  { %88 = vset.pattern.permute.xlu0 %v116_v5  ;;  %p99_p4 = pnand %p98_p3, %p92_p0 }
   0xb   :  { %55 = vperm.xlu0 %88, %v16_v0  }
  0x7d   :  { %v21_v13 = vpop.permute.xlu0 %20  ;;  %v36_v14 = vpop.permute.xlu1 %35 }
  0x7e   :  { %v27_v18 = vmul.f32 %v26_v12, %v21_v13  ;;  %v42_v20 = vmul.f32 %v41_v15, %v36_v14 }
  0x81   :  { %v31_v19 = vpop.permute.xlu0 %30 }
  0x82   :  { %v33_v21 = vadd.f32 %v31_v19, %v27_v18  ;;  %v46_v22 = vpop.permute.xlu1 %45 }
  0x83   :  { %v52_v23 = vmul.f32 %v51_v16, %v46_v22 }
  0x84   :  { %v43_v25 = vadd.f32 %v42_v20, %v33_v21 }
  0x86   :  { %v53_v26 = vadd.f32 %v52_v23, %v43_v25  ;;  %v56_v27 = vpop.permute.xlu0 %55 }
  0x87   :  { %v62_v28 = vmul.f32 %v61_v24, %v56_v27 }
  0x89   :  { %v63_v29 = vadd.f32 %v62_v28, %v53_v26 }
  0x8b   :  { %89 = vtanh.f32 %v63_v29 }
  0x98   :  { %v90_v30 = vpop.eup %89 }
  0x99   :  { %65 = vst [vmem:[#allocation2] sm:$0xff] %v90_v30 }
  0x9a   :  { %102 = shalt.err (!%p99_p4)
}
  0x9b   :  { %75 = dma.vmem_to_hbm [thread:$0]  %s73_s2, 128, %s153_s3, [#allocation3]  }
  0x9c   :  { %111 = dma.done.wait [#allocation3], 128  }
  0x9d   :  { %112 = vsyncadd [#allocation3], 4294967168 }
  0x9e   :  { %79 = vsyncpa [#allocation3], 1 }

</bundles_post_ra>
